<compile_context>
chip_gen: v7x
topology: tpu7x:2x2x1
jax: 0.10.0
libtpu: 0.0.40
codegen_flags: <defaults>
</compile_context>

<pallas_src>
import jax
import jax.numpy as jnp
from jax.experimental import pallas as pl
from jax.experimental.pallas import tpu as pltpu

_LANES = 1024                      # lane-dense last dim (multiple of 128)
_TARGET_TILE_BYTES = 4 << 20       # ~4 MiB per tile, dtype-independent
_MIN_BLOCK_ROWS = 64               # 256 KiB f32 tile floor (per-step overhead)
_MIN_GRID_STEPS = 8                # >= 4 grid steps per TensorCore on v7x
_VMEM_LIMIT_BYTES = 48 * 1024 * 1024
_PALLAS_MIN_ELEMS = 1 << 20        # ~4 MiB per f32 tensor; below this XLA wins


def _add_large_kernel(a_ref, b_ref, c_ref, z_ref):
    # x = a + b ; y = x + c ; z = x + y   (== 2a + 2b + c)
    x = a_ref[...] + b_ref[...]
    z_ref[...] = x + (x + c_ref[...])


def _round_up(x: int, m: int) -> int:
    return ((x + m - 1) // m) * m


def _pick_block_rows(rows: int, dtype_bytes: int) -> int:
    """Constant-byte (~4 MiB) tiles, >= ~8 grid steps, >= 64-row floor."""
    if rows <= 8:
        return rows  # block == full dim, satisfies the (8, 128) layout rule
    cap = max(8, (_TARGET_TILE_BYTES // (_LANES * dtype_bytes)) // 8 * 8)
    want = _round_up(pl.cdiv(rows, _MIN_GRID_STEPS), 8)
    block_rows = min(cap, max(_MIN_BLOCK_ROWS, want))
    if block_rows >= rows:
        return rows
    return block_rows


def _pallas_add_large(a: jax.Array, b: jax.Array, c: jax.Array) -> jax.Array:
    """Fast path: requires a.size % _LANES == 0 (no pad / no slice copies)."""
    orig_shape = a.shape
    dtype = a.dtype
    total = a.size
    rows = total // _LANES
    dtype_bytes = jnp.dtype(dtype).itemsize
    block_rows = _pick_block_rows(rows, dtype_bytes)

    # Reshape of a contiguous flat array is free — no jnp.pad, no copies.
    a2 = a.reshape(rows, _LANES)
    b2 = b.reshape(rows, _LANES)
    c2 = c.reshape(rows, _LANES)

    spec = pl.BlockSpec((block_rows, _LANES), lambda i: (i, 0))
    z2 = pl.pallas_call(
        _add_large_kernel,
        out_shape=jax.ShapeDtypeStruct((rows, _LANES), dtype),
        grid=(pl.cdiv(rows, block_rows),),   # partial edge block handled by Pallas
        in_specs=[spec, spec, spec],
        out_specs=spec,
        compiler_params=pltpu.CompilerParams(
            dimension_semantics=("parallel",),     # v7x: shard grid over 2 TCs
            vmem_limit_bytes=_VMEM_LIMIT_BYTES,
        ),
    )(a2, b2, c2)

    return z2.reshape(orig_shape)


def module_add_large(a: jax.Array, b: jax.Array, c: jax.Array,
                     *, force_pallas: bool = False) -> jax.Array:
    assert a.shape == b.shape == c.shape
    assert a.dtype == b.dtype == c.dtype
    lane_aligned = a.size > 0 and a.size % _LANES == 0
    if lane_aligned and (force_pallas or a.size >= _PALLAS_MIN_ELEMS):
        return _pallas_add_large(a, b, c)
    # Ragged or tiny inputs: XLA fuses the three adds into one roofline-bound
    # loop with zero extra copies; Pallas only wins when it can move exactly
    # 4N bytes (the no-pad fast path), so we never pad-copy the whole tensor.
    x = a + b
    return x + (x + c)


if __name__ == "__main__":
    key = jax.random.PRNGKey(0)

    def check(z, a, b, c):
        z_ref = 2.0 * a + 2.0 * b + c
        assert z.shape == a.shape and z.dtype == a.dtype
        assert jnp.allclose(z, z_ref, atol=1e-5, rtol=1e-5)

    # Case 1: the module's default (10, 10, 10) inputs.  1000 elems is not
    # lane-aligned, so the wrapper takes the fused XLA path (by design).
    ka, kb, kc = jax.random.split(key, 3)
    a = jax.random.normal(ka, (10, 10, 10), dtype=jnp.float32)
    b = jax.random.normal(kb, (10, 10, 10), dtype=jnp.float32)
    c = jax.random.normal(kc, (10, 10, 10), dtype=jnp.float32)
    z = module_add_large(a, b, c)
    jax.block_until_ready(z)
    check(z, a, b, c)

    # Case 2: small lane-aligned shape, single-block Pallas path (forced).
    k2a, k2b, k2c = jax.random.split(jax.random.PRNGKey(1), 3)
    shape2 = (8, 32, 128)           # 32768 elems -> (32, 1024) slab, grid = 1
    a2 = jax.random.normal(k2a, shape2, dtype=jnp.float32)
    b2 = jax.random.normal(k2b, shape2, dtype=jnp.float32)
    c2 = jax.random.normal(k2c, shape2, dtype=jnp.float32)
    z2 = module_add_large(a2, b2, c2, force_pallas=True)
    jax.block_until_ready(z2)
    check(z2, a2, b2, c2)

    # Case 3: multi-block pipelined path with a PARTIAL edge block:
    # 1,024,000 elems -> rows = 1000, block_rows = 128 -> grid = 8,
    # last block covers only 104 rows (masked edge, no padding copies).
    k3a, k3b, k3c = jax.random.split(jax.random.PRNGKey(2), 3)
    shape3 = (125, 64, 128)
    a3 = jax.random.normal(k3a, shape3, dtype=jnp.float32)
    b3 = jax.random.normal(k3b, shape3, dtype=jnp.float32)
    c3 = jax.random.normal(k3c, shape3, dtype=jnp.float32)
    z3 = module_add_large(a3, b3, c3, force_pallas=True)
    jax.block_until_ready(z3)
    check(z3, a3, b3, c3)

    print("KERNEL_OK")
</pallas_src>

<mosaic_0001>
module attributes {stable_mosaic.version = 11 : i64} {
  func.func @_add_large_kernel(%arg0: i32, %arg1: memref<32x1024xf32, #tpu.memory_space<vmem>>, %arg2: memref<32x1024xf32, #tpu.memory_space<vmem>>, %arg3: memref<32x1024xf32, #tpu.memory_space<vmem>>, %arg4: memref<32x1024xf32, #tpu.memory_space<vmem>>) attributes {dimension_semantics = [#tpu.dimension_semantics<parallel>], iteration_bounds = array<i64: 1>, scalar_prefetch = 0 : i64, scratch_operands = 0 : i64, tpu.core_type = #tpu.core_type<tc>, window_params = [{transform_indices = @transform_0, window_bounds = array<i64: 32, 1024>}, {transform_indices = @transform_1, window_bounds = array<i64: 32, 1024>}, {transform_indices = @transform_2, window_bounds = array<i64: 32, 1024>}, {transform_indices = @transform_3, window_bounds = array<i64: 32, 1024>}]} {
    %c0 = arith.constant 0 : index
    %c0_0 = arith.constant 0 : index
    %0 = vector.load %arg1[%c0, %c0_0] : memref<32x1024xf32, #tpu.memory_space<vmem>>, vector<32x1024xf32>
    %c0_1 = arith.constant 0 : index
    %c0_2 = arith.constant 0 : index
    %1 = vector.load %arg2[%c0_1, %c0_2] : memref<32x1024xf32, #tpu.memory_space<vmem>>, vector<32x1024xf32>
    %2 = arith.addf %0, %1 : vector<32x1024xf32>
    %c0_3 = arith.constant 0 : index
    %c0_4 = arith.constant 0 : index
    %3 = vector.load %arg3[%c0_3, %c0_4] : memref<32x1024xf32, #tpu.memory_space<vmem>>, vector<32x1024xf32>
    %4 = arith.addf %2, %3 : vector<32x1024xf32>
    %5 = arith.addf %2, %4 : vector<32x1024xf32>
    %c0_5 = arith.constant 0 : index
    %c0_6 = arith.constant 0 : index
    %6 = vector.load %arg4[%c0_5, %c0_6] : memref<32x1024xf32, #tpu.memory_space<vmem>>, vector<32x1024xf32>
    tpu.vector_store %arg4[%c0_5, %c0_6], %5 {strides = array<i32>} : memref<32x1024xf32, #tpu.memory_space<vmem>>, vector<32x1024xf32>,
    return
  }
  func.func @transform_0(%arg0: i32) -> (i32, i32) {
    %c0_i32 = arith.constant 0 : i32
    %c0_i32_0 = arith.constant 0 : i32
    return %arg0, %c0_i32 : i32, i32
  }
  func.func @transform_1(%arg0: i32) -> (i32, i32) {
    %c0_i32 = arith.constant 0 : i32
    %c0_i32_0 = arith.constant 0 : i32
    return %arg0, %c0_i32 : i32, i32
  }
  func.func @transform_2(%arg0: i32) -> (i32, i32) {
    %c0_i32 = arith.constant 0 : i32
    %c0_i32_0 = arith.constant 0 : i32
    return %arg0, %c0_i32 : i32, i32
  }
  func.func @transform_3(%arg0: i32) -> (i32, i32) {
    %c0_i32 = arith.constant 0 : i32
    %c0_i32_0 = arith.constant 0 : i32
    return %arg0, %c0_i32 : i32, i32
  }
}

</mosaic_0001>

<bundles_post_ra>
// kernel: tpu_custom_call.1
= control target key start
LH: loop header
LB: loop body
LE: loop exit
PB: predicated region body
PF: predicated region fallthrough
CT: control target
= control target key end

     0   :  { %8 = vsyncpa [#allocation3], 0  ;;  %s491_s0 = inlined_call_operand.hbm [shape: f32[32,1024], index: 0, kind: input, shape index: {}]   ;;  %s492_s1 = inlined_call_operand.hbm [shape: f32[32,1024], index: 1, kind: input, shape index: {}]   ;;  %s493_s2 = inlined_call_operand.hbm [shape: f32[32,1024], index: 2, kind: input, shape index: {}]   ;;  %s494_s3 = inlined_call_operand.hbm [shape: f32[32,1024], index: 3, kind: output, shape index: {}]  }
   0x1   :  { %9 = vsyncpa [#allocation6], 0 }
   0x2   :  { %10 = vsyncpa [#allocation4], 0  ;;  %s398_s12 = smov [#allocation5]   ;;  %s399_s14 = smov [#allocation2]  }
   0x3   :  { %s28_s13 = sshll.u32 %s398_s12, 4  ;;  %s16_s15 = sshll.u32 %s399_s14, 4  ;;  %s29_s13 = int_to_ptr.vmem [resolvable:$true] %s28_s13  ;;  %s424_s15 = int_to_ptr.vmem [resolvable:$true] %s16_s15 }
   0x4   :  { %s304_s18 = scalar_lea.hbm %s492_s1, 4096 }
   0x5   :  { %p305_p0 = scmp.ne.s32.totalorder %s492_s1, %s304_s18  ;;  %p308_p1 = scmp.lt.u32.totalorder %s304_s18, %s492_s1 }
   0x7   :  { %p310_p2 = pnand %p308_p1, %p305_p0 }
   0x9   :  { %313 = shalt.err (!%p310_p2)
}
   0xa   :  { %s314_s23 = scalar_lea.vmem %s29_s13, 4096  ;;  %p319_p4 = scmp.lt.s32.totalorder %s29_s13, %s29_s13 }
   0xb   :  { %p315_p3 = scmp.ne.s32.totalorder %s29_s13, %s314_s23  ;;  %p320_p5 = scmp.lt.s32.totalorder %s314_s23, %s314_s23 }
   0xd   :  { %p321_p6 = por %p320_p5, %p319_p4 }
   0xf   :  { %p322_p7 = pnand %p321_p6, %p315_p3 }
  0x11   :  { %325 = shalt.err (!%p322_p7)
}
  0x12   :  { %s400_s24 = smov 1024   ;;  %s401_s25 = smov 64  }
  0x13   :  { %34 = dma.hbm_to_vmem [thread:$0]  %s492_s1, 4096, %s29_s13, [#allocation6], %s400_s24, %s400_s24, %s401_s25  }
  0x14   :  { %s326_s30 = scalar_lea.hbm %s491_s0, 4096 }
  0x15   :  { %p327_p8 = scmp.ne.s32.totalorder %s491_s0, %s326_s30  ;;  %p330_p9 = scmp.lt.u32.totalorder %s326_s30, %s491_s0 }
  0x17   :  { %p332_p10 = pnand %p330_p9, %p327_p8 }
  0x19   :  { %335 = shalt.err (!%p332_p10)
}
  0x1a   :  { %s336_s8 = scalar_lea.vmem %s424_s15, 4096  ;;  %p341_p12 = scmp.lt.s32.totalorder %s424_s15, %s424_s15 }
  0x1b   :  { %p337_p11 = scmp.ne.s32.totalorder %s424_s15, %s336_s8  ;;  %p342_p13 = scmp.lt.s32.totalorder %s336_s8, %s336_s8 }
  0x1d   :  { %p343_p0 = por %p342_p13, %p341_p12 }
  0x1f   :  { %p344_p1 = pnand %p343_p0, %p337_p11 }
  0x21   :  { %347 = shalt.err (!%p344_p1)
}
  0x22   :  { %22 = dma.hbm_to_vmem [thread:$0]  %s491_s0, 4096, %s424_s15, [#allocation3], %s400_s24, %s400_s24, %s401_s25  }
  0x23   :  { %s402_s10 = smov [#allocation7]   ;;  %s348_s14 = scalar_lea.hbm %s493_s2, 4096 }
  0x24   :  { %s40_s11 = sshll.u32 %s402_s10, 4  ;;  %p349_p2 = scmp.ne.s32.totalorder %s493_s2, %s348_s14  ;;  %s41_s11 = int_to_ptr.vmem [resolvable:$true] %s40_s11 }
  0x25   :  { %p352_p3 = scmp.lt.u32.totalorder %s348_s14, %s493_s2 }
  0x27   :  { %p354_p4 = pnand %p352_p3, %p349_p2 }
  0x29   :  { %357 = shalt.err (!%p354_p4)
}
  0x2a   :  { %s358_s20 = scalar_lea.vmem %s41_s11, 4096  ;;  %p363_p6 = scmp.lt.s32.totalorder %s41_s11, %s41_s11 }
  0x2b   :  { %p359_p5 = scmp.ne.s32.totalorder %s41_s11, %s358_s20  ;;  %p364_p7 = scmp.lt.s32.totalorder %s358_s20, %s358_s20 }
  0x2d   :  { %p365_p8 = por %p364_p7, %p363_p6 }
  0x2f   :  { %p366_p9 = pnand %p365_p8, %p359_p5 }
  0x31   :  { %369 = shalt.err (!%p366_p9)
}
  0x32   :  { %46 = dma.hbm_to_vmem [thread:$0]  %s493_s2, 4096, %s41_s11, [#allocation6], %s400_s24, %s400_s24, %s401_s25  }
  0x33   :  { %392 = dma.done.wait [#allocation3], 4096  }
  0x34   :  { %393 = vsyncadd [#allocation3], 4294963200 }
  0x35   :  { %394 = dma.done.wait [#allocation6], 8192  }
  0x36   :  { %395 = vsyncadd [#allocation6], 4294959104  ;;  %v56_v0 = vld [vmem:[#allocation2] sm:$0xff]  ;;  %v57_v4 = vld [vmem:[#allocation2 + $0x8] sm:$0xff]  ;;  %s403_s2 = smov [#allocation8]  }
  0x37   :  { %v88_v1 = vld [vmem:[#allocation5] sm:$0xff]  ;;  %v89_v5 = vld [vmem:[#allocation5 + $0x8] sm:$0xff]  ;;  %v58_v8 = vld [vmem:[#allocation2 + $0x10] sm:$0xff]  ;;  %s285_s21 = sshll.u32 %s403_s2, 4  ;;  %s286_s21 = int_to_ptr.vmem [resolvable:$true] %s285_s21 }
  0x38   :  { %v152_v2 = vld [vmem:[#allocation7] sm:$0xff]  ;;  %v120_v3 = vadd.f32 %v88_v1, %v56_v0  ;;  %v153_v6 = vld [vmem:[#allocation7 + $0x8] sm:$0xff]  ;;  %v121_v7 = vadd.f32 %v89_v5, %v57_v4  ;;  %v90_v9 = vld [vmem:[#allocation5 + $0x10] sm:$0xff]  ;;  %s370_s22 = scalar_lea.vmem %s286_s21, 4096  ;;  %p375_p11 = scmp.lt.s32.totalorder %s286_s21, %s286_s21 }
  0x39   :  { %v154_v10 = vld [vmem:[#allocation7 + $0x10] sm:$0xff]  ;;  %v122_v12 = vadd.f32 %v90_v9, %v58_v8  ;;  %v59_v13 = vld [vmem:[#allocation2 + $0x18] sm:$0xff]  ;;  %v60_v18 = vld [vmem:[#allocation2 + $0x20] sm:$0xff]  ;;  %p371_p10 = scmp.ne.s32.totalorder %s286_s21, %s370_s22  ;;  %p376_p12 = scmp.lt.s32.totalorder %s370_s22, %s370_s22 }
  0x3a   :  { %v184_v11 = vadd.f32 %v152_v2, %v120_v3  ;;  %v91_v14 = vld [vmem:[#allocation5 + $0x18] sm:$0xff]  ;;  %v185_v16 = vadd.f32 %v153_v6, %v121_v7  ;;  %v92_v19 = vld [vmem:[#allocation5 + $0x20] sm:$0xff]  ;;  %v61_v24 = vld [vmem:[#allocation2 + $0x28] sm:$0xff] }
  0x3b   :  { %v155_v15 = vld [vmem:[#allocation7 + $0x18] sm:$0xff]  ;;  %v123_v17 = vadd.f32 %v91_v14, %v59_v13  ;;  %v156_v20 = vld [vmem:[#allocation7 + $0x20] sm:$0xff]  ;;  %v186_v22 = vadd.f32 %v154_v10, %v122_v12  ;;  %v124_v23 = vadd.f32 %v92_v19, %v60_v18  ;;  %v93_v25 = vld [vmem:[#allocation5 + $0x28] sm:$0xff]  ;;  %p377_p13 = por %p376_p12, %p375_p11 }
  0x3c   :  { %v216_v21 = vadd.f32 %v184_v11, %v120_v3  ;;  %v157_v26 = vld [vmem:[#allocation7 + $0x28] sm:$0xff]  ;;  %v217_v27 = vadd.f32 %v185_v16, %v121_v7  ;;  %v125_v29 = vadd.f32 %v93_v25, %v61_v24  ;;  %v62_v30 = vld [vmem:[#allocation2 + $0x30] sm:$0xff]  ;;  %v63_v36 = vld [vmem:[#allocation2 + $0x38] sm:$0xff] }
  0x3d   :  { %v187_v28 = vadd.f32 %v155_v15, %v123_v17  ;;  %v94_v31 = vld [vmem:[#allocation5 + $0x30] sm:$0xff]  ;;  %v218_v33 = vadd.f32 %v186_v22, %v122_v12  ;;  %v188_v34 = vadd.f32 %v156_v20, %v124_v23  ;;  %v95_v37 = vld [vmem:[#allocation5 + $0x38] sm:$0xff]  ;;  %v64_v42 = vld [vmem:[#allocation2 + $0x40] sm:$0xff]  ;;  %p378_p0 = pnand %p377_p13, %p371_p10 }
  0x3e   :  { %v158_v32 = vld [vmem:[#allocation7 + $0x30] sm:$0xff]  ;;  %248 = vst [vmem:[#allocation8] sm:$0xff] %v216_v21  ;;  %v126_v35 = vadd.f32 %v94_v31, %v62_v30  ;;  %v159_v38 = vld [vmem:[#allocation7 + $0x38] sm:$0xff]  ;;  %249 = vst [vmem:[#allocation8 + $0x8] sm:$0xff] %v217_v27  ;;  %v189_v40 = vadd.f32 %v157_v26, %v125_v29  ;;  %v127_v41 = vadd.f32 %v95_v37, %v63_v36 }
  0x3f   :  { %v219_v39 = vadd.f32 %v187_v28, %v123_v17  ;;  %v96_v43 = vld [vmem:[#allocation5 + $0x40] sm:$0xff]  ;;  %250 = vst [vmem:[#allocation8 + $0x10] sm:$0xff] %v218_v33  ;;  %v220_v45 = vadd.f32 %v188_v34, %v124_v23  ;;  %v65_v48 = vld [vmem:[#allocation2 + $0x48] sm:$0xff]  ;;  %v66_v54 = vld [vmem:[#allocation2 + $0x50] sm:$0xff] }
  0x40   :  { %v160_v44 = vld [vmem:[#allocation7 + $0x40] sm:$0xff]  ;;  %v190_v46 = vadd.f32 %v158_v32, %v126_v35  ;;  %v128_v47 = vadd.f32 %v96_v43, %v64_v42  ;;  %v97_v49 = vld [vmem:[#allocation5 + $0x48] sm:$0xff]  ;;  %v221_v51 = vadd.f32 %v189_v40, %v125_v29  ;;  %v191_v52 = vadd.f32 %v159_v38, %v127_v41  ;;  %v98_v55 = vld [vmem:[#allocation5 + $0x50] sm:$0xff] }
  0x41   :  { %v161_v50 = vld [vmem:[#allocation7 + $0x48] sm:$0xff]  ;;  %251 = vst [vmem:[#allocation8 + $0x18] sm:$0xff] %v219_v39  ;;  %v129_v53 = vadd.f32 %v97_v49, %v65_v48  ;;  %v162_v56 = vld [vmem:[#allocation7 + $0x50] sm:$0xff]  ;;  %252 = vst [vmem:[#allocation8 + $0x20] sm:$0xff] %v220_v45  ;;  %v130_v59 = vadd.f32 %v98_v55, %v66_v54 }
  0x42   :  { %v222_v57 = vadd.f32 %v190_v46, %v126_v35  ;;  %v192_v58 = vadd.f32 %v160_v44, %v128_v47  ;;  %v67_v60 = vld [vmem:[#allocation2 + $0x58] sm:$0xff]  ;;  %253 = vst [vmem:[#allocation8 + $0x28] sm:$0xff] %v221_v51  ;;  %v223_v63 = vadd.f32 %v191_v52, %v127_v41  ;;  %v68_v2 = vld [vmem:[#allocation2 + $0x60] sm:$0xff]  ;;  %v69_v8 = vld [vmem:[#allocation2 + $0x68] sm:$0xff] }
  0x43   :  { %v99_v61 = vld [vmem:[#allocation5 + $0x58] sm:$0xff]  ;;  %v193_v0 = vadd.f32 %v161_v50, %v129_v53  ;;  %v100_v3 = vld [vmem:[#allocation5 + $0x60] sm:$0xff]  ;;  %v194_v6 = vadd.f32 %v162_v56, %v130_v59  ;;  %v101_v9 = vld [vmem:[#allocation5 + $0x68] sm:$0xff] }
  0x44   :  { %v163_v62 = vld [vmem:[#allocation7 + $0x58] sm:$0xff]  ;;  %v131_v1 = vadd.f32 %v99_v61, %v67_v60  ;;  %v164_v4 = vld [vmem:[#allocation7 + $0x60] sm:$0xff]  ;;  %254 = vst [vmem:[#allocation8 + $0x30] sm:$0xff] %v222_v57  ;;  %v224_v5 = vadd.f32 %v192_v58, %v128_v47  ;;  %v132_v7 = vadd.f32 %v100_v3, %v68_v2  ;;  %v165_v10 = vld [vmem:[#allocation7 + $0x68] sm:$0xff]  ;;  %v133_v13 = vadd.f32 %v101_v9, %v69_v8 }
  0x45   :  { %255 = vst [vmem:[#allocation8 + $0x38] sm:$0xff] %v223_v63  ;;  %v225_v11 = vadd.f32 %v193_v0, %v129_v53  ;;  %v70_v14 = vld [vmem:[#allocation2 + $0x70] sm:$0xff]  ;;  %v226_v17 = vadd.f32 %v194_v6, %v130_v59  ;;  %v71_v20 = vld [vmem:[#allocation2 + $0x78] sm:$0xff]  ;;  %v72_v26 = vld [vmem:[#allocation2 + $0x80] sm:$0xff] }
  0x46   :  { %v195_v12 = vadd.f32 %v163_v62, %v131_v1  ;;  %v102_v15 = vld [vmem:[#allocation5 + $0x70] sm:$0xff]  ;;  %256 = vst [vmem:[#allocation8 + $0x40] sm:$0xff] %v224_v5  ;;  %v196_v18 = vadd.f32 %v164_v4, %v132_v7  ;;  %v103_v21 = vld [vmem:[#allocation5 + $0x78] sm:$0xff]  ;;  %v197_v24 = vadd.f32 %v165_v10, %v133_v13  ;;  %v104_v27 = vld [vmem:[#allocation5 + $0x80] sm:$0xff] }
  0x47   :  { %v166_v16 = vld [vmem:[#allocation7 + $0x70] sm:$0xff]  ;;  %v134_v19 = vadd.f32 %v102_v15, %v70_v14  ;;  %v167_v22 = vld [vmem:[#allocation7 + $0x78] sm:$0xff]  ;;  %257 = vst [vmem:[#allocation8 + $0x48] sm:$0xff] %v225_v11  ;;  %v135_v25 = vadd.f32 %v103_v21, %v71_v20  ;;  %v168_v28 = vld [vmem:[#allocation7 + $0x80] sm:$0xff]  ;;  %v136_v31 = vadd.f32 %v104_v27, %v72_v26 }
  0x48   :  { %v227_v23 = vadd.f32 %v195_v12, %v131_v1  ;;  %258 = vst [vmem:[#allocation8 + $0x50] sm:$0xff] %v226_v17  ;;  %v228_v29 = vadd.f32 %v196_v18, %v132_v7  ;;  %v73_v32 = vld [vmem:[#allocation2 + $0x88] sm:$0xff]  ;;  %v229_v35 = vadd.f32 %v197_v24, %v133_v13  ;;  %v74_v38 = vld [vmem:[#allocation2 + $0x90] sm:$0xff]  ;;  %v75_v44 = vld [vmem:[#allocation2 + $0x98] sm:$0xff] }
  0x49   :  { %v198_v30 = vadd.f32 %v166_v16, %v134_v19  ;;  %v105_v33 = vld [vmem:[#allocation5 + $0x88] sm:$0xff]  ;;  %v199_v36 = vadd.f32 %v167_v22, %v135_v25  ;;  %v106_v39 = vld [vmem:[#allocation5 + $0x90] sm:$0xff]  ;;  %v200_v42 = vadd.f32 %v168_v28, %v136_v31  ;;  %v107_v45 = vld [vmem:[#allocation5 + $0x98] sm:$0xff] }
  0x4a   :  { %v169_v34 = vld [vmem:[#allocation7 + $0x88] sm:$0xff]  ;;  %259 = vst [vmem:[#allocation8 + $0x58] sm:$0xff] %v227_v23  ;;  %v137_v37 = vadd.f32 %v105_v33, %v73_v32  ;;  %v170_v40 = vld [vmem:[#allocation7 + $0x90] sm:$0xff]  ;;  %260 = vst [vmem:[#allocation8 + $0x60] sm:$0xff] %v228_v29  ;;  %v138_v43 = vadd.f32 %v106_v39, %v74_v38  ;;  %v139_v49 = vadd.f32 %v107_v45, %v75_v44 }
  0x4b   :  { %v230_v41 = vadd.f32 %v198_v30, %v134_v19  ;;  %v171_v46 = vld [vmem:[#allocation7 + $0x98] sm:$0xff]  ;;  %261 = vst [vmem:[#allocation8 + $0x68] sm:$0xff] %v229_v35  ;;  %v231_v47 = vadd.f32 %v199_v36, %v135_v25  ;;  %v76_v50 = vld [vmem:[#allocation2 + $0xa0] sm:$0xff]  ;;  %v232_v53 = vadd.f32 %v200_v42, %v136_v31  ;;  %v77_v56 = vld [vmem:[#allocation2 + $0xa8] sm:$0xff] }
  0x4c   :  { %v201_v48 = vadd.f32 %v169_v34, %v137_v37  ;;  %v108_v51 = vld [vmem:[#allocation5 + $0xa0] sm:$0xff]  ;;  %v202_v54 = vadd.f32 %v170_v40, %v138_v43  ;;  %v109_v57 = vld [vmem:[#allocation5 + $0xa8] sm:$0xff]  ;;  %v203_v60 = vadd.f32 %v171_v46, %v139_v49  ;;  %v78_v62 = vld [vmem:[#allocation2 + $0xb0] sm:$0xff] }
  0x4d   :  { %v172_v52 = vld [vmem:[#allocation7 + $0xa0] sm:$0xff]  ;;  %262 = vst [vmem:[#allocation8 + $0x70] sm:$0xff] %v230_v41  ;;  %v140_v55 = vadd.f32 %v108_v51, %v76_v50  ;;  %v173_v58 = vld [vmem:[#allocation7 + $0xa8] sm:$0xff]  ;;  %263 = vst [vmem:[#allocation8 + $0x78] sm:$0xff] %v231_v47  ;;  %v141_v61 = vadd.f32 %v109_v57, %v77_v56 }
  0x4e   :  { %v233_v59 = vadd.f32 %v201_v48, %v137_v37  ;;  %v110_v63 = vld [vmem:[#allocation5 + $0xb0] sm:$0xff]  ;;  %264 = vst [vmem:[#allocation8 + $0x80] sm:$0xff] %v232_v53  ;;  %v234_v1 = vadd.f32 %v202_v54, %v138_v43  ;;  %v79_v4 = vld [vmem:[#allocation2 + $0xb8] sm:$0xff]  ;;  %v235_v7 = vadd.f32 %v203_v60, %v139_v49  ;;  %v80_v10 = vld [vmem:[#allocation2 + $0xc0] sm:$0xff] }
  0x4f   :  { %v174_v0 = vld [vmem:[#allocation7 + $0xb0] sm:$0xff]  ;;  %v204_v2 = vadd.f32 %v172_v52, %v140_v55  ;;  %v142_v3 = vadd.f32 %v110_v63, %v78_v62  ;;  %v111_v5 = vld [vmem:[#allocation5 + $0xb8] sm:$0xff]  ;;  %v205_v8 = vadd.f32 %v173_v58, %v141_v61  ;;  %v112_v11 = vld [vmem:[#allocation5 + $0xc0] sm:$0xff] }
  0x50   :  { %v175_v6 = vld [vmem:[#allocation7 + $0xb8] sm:$0xff]  ;;  %265 = vst [vmem:[#allocation8 + $0x88] sm:$0xff] %v233_v59  ;;  %v143_v9 = vadd.f32 %v111_v5, %v79_v4  ;;  %v176_v12 = vld [vmem:[#allocation7 + $0xc0] sm:$0xff]  ;;  %266 = vst [vmem:[#allocation8 + $0x90] sm:$0xff] %v234_v1  ;;  %v144_v15 = vadd.f32 %v112_v11, %v80_v10 }
  0x51   :  { %v236_v13 = vadd.f32 %v204_v2, %v140_v55  ;;  %v206_v14 = vadd.f32 %v174_v0, %v142_v3  ;;  %v81_v16 = vld [vmem:[#allocation2 + $0xc8] sm:$0xff]  ;;  %267 = vst [vmem:[#allocation8 + $0x98] sm:$0xff] %v235_v7  ;;  %v237_v19 = vadd.f32 %v205_v8, %v141_v61  ;;  %v82_v22 = vld [vmem:[#allocation2 + $0xd0] sm:$0xff]  ;;  %v83_v28 = vld [vmem:[#allocation2 + $0xd8] sm:$0xff] }
  0x52   :  { %v113_v17 = vld [vmem:[#allocation5 + $0xc8] sm:$0xff]  ;;  %v207_v20 = vadd.f32 %v175_v6, %v143_v9  ;;  %v114_v23 = vld [vmem:[#allocation5 + $0xd0] sm:$0xff]  ;;  %v208_v26 = vadd.f32 %v176_v12, %v144_v15  ;;  %v115_v29 = vld [vmem:[#allocation5 + $0xd8] sm:$0xff] }
  0x53   :  { %v177_v18 = vld [vmem:[#allocation7 + $0xc8] sm:$0xff]  ;;  %v145_v21 = vadd.f32 %v113_v17, %v81_v16  ;;  %v178_v24 = vld [vmem:[#allocation7 + $0xd0] sm:$0xff]  ;;  %268 = vst [vmem:[#allocation8 + $0xa0] sm:$0xff] %v236_v13  ;;  %v238_v25 = vadd.f32 %v206_v14, %v142_v3  ;;  %v146_v27 = vadd.f32 %v114_v23, %v82_v22  ;;  %v179_v30 = vld [vmem:[#allocation7 + $0xd8] sm:$0xff]  ;;  %v147_v33 = vadd.f32 %v115_v29, %v83_v28 }
  0x54   :  { %269 = vst [vmem:[#allocation8 + $0xa8] sm:$0xff] %v237_v19  ;;  %v239_v31 = vadd.f32 %v207_v20, %v143_v9  ;;  %v84_v34 = vld [vmem:[#allocation2 + $0xe0] sm:$0xff]  ;;  %v240_v37 = vadd.f32 %v208_v26, %v144_v15  ;;  %v85_v40 = vld [vmem:[#allocation2 + $0xe8] sm:$0xff]  ;;  %v86_v46 = vld [vmem:[#allocation2 + $0xf0] sm:$0xff] }
  0x55   :  { %v209_v32 = vadd.f32 %v177_v18, %v145_v21  ;;  %v116_v35 = vld [vmem:[#allocation5 + $0xe0] sm:$0xff]  ;;  %270 = vst [vmem:[#allocation8 + $0xb0] sm:$0xff] %v238_v25  ;;  %v210_v38 = vadd.f32 %v178_v24, %v146_v27  ;;  %v117_v41 = vld [vmem:[#allocation5 + $0xe8] sm:$0xff]  ;;  %v211_v44 = vadd.f32 %v179_v30, %v147_v33  ;;  %v118_v47 = vld [vmem:[#allocation5 + $0xf0] sm:$0xff] }
  0x56   :  { %v180_v36 = vld [vmem:[#allocation7 + $0xe0] sm:$0xff]  ;;  %v148_v39 = vadd.f32 %v116_v35, %v84_v34  ;;  %v181_v42 = vld [vmem:[#allocation7 + $0xe8] sm:$0xff]  ;;  %271 = vst [vmem:[#allocation8 + $0xb8] sm:$0xff] %v239_v31  ;;  %v149_v45 = vadd.f32 %v117_v41, %v85_v40  ;;  %v182_v48 = vld [vmem:[#allocation7 + $0xf0] sm:$0xff]  ;;  %v150_v51 = vadd.f32 %v118_v47, %v86_v46 }
  0x57   :  { %v241_v43 = vadd.f32 %v209_v32, %v145_v21  ;;  %272 = vst [vmem:[#allocation8 + $0xc0] sm:$0xff] %v240_v37  ;;  %v242_v49 = vadd.f32 %v210_v38, %v146_v27  ;;  %v87_v52 = vld [vmem:[#allocation2 + $0xf8] sm:$0xff]  ;;  %v243_v55 = vadd.f32 %v211_v44, %v147_v33 }
  0x58   :  { %v212_v50 = vadd.f32 %v180_v36, %v148_v39  ;;  %v119_v53 = vld [vmem:[#allocation5 + $0xf8] sm:$0xff]  ;;  %v213_v56 = vadd.f32 %v181_v42, %v149_v45  ;;  %v214_v59 = vadd.f32 %v182_v48, %v150_v51 }
  0x59   :  { %v183_v54 = vld [vmem:[#allocation7 + $0xf8] sm:$0xff]  ;;  %273 = vst [vmem:[#allocation8 + $0xc8] sm:$0xff] %v241_v43  ;;  %v151_v57 = vadd.f32 %v119_v53, %v87_v52  ;;  %274 = vst [vmem:[#allocation8 + $0xd0] sm:$0xff] %v242_v49 }
  0x5a   :  { %v244_v58 = vadd.f32 %v212_v50, %v148_v39  ;;  %275 = vst [vmem:[#allocation8 + $0xd8] sm:$0xff] %v243_v55  ;;  %v245_v60 = vadd.f32 %v213_v56, %v149_v45  ;;  %v246_v62 = vadd.f32 %v214_v59, %v150_v51 }
  0x5b   :  { %v215_v61 = vadd.f32 %v183_v54, %v151_v57 }
  0x5c   :  { %276 = vst [vmem:[#allocation8 + $0xe0] sm:$0xff] %v244_v58  ;;  %277 = vst [vmem:[#allocation8 + $0xe8] sm:$0xff] %v245_v60 }
  0x5d   :  { %v247_v63 = vadd.f32 %v215_v61, %v151_v57  ;;  %278 = vst [vmem:[#allocation8 + $0xf0] sm:$0xff] %v246_v62 }
  0x5f   :  { %279 = vst [vmem:[#allocation8 + $0xf8] sm:$0xff] %v247_v63 }
  0x60   :  { %381 = shalt.err (!%p378_p0)
}
  0x61   :  { %s382_s27 = scalar_lea.hbm %s494_s3, 4096 }
  0x62   :  { %p383_p1 = scmp.ne.s32.totalorder %s494_s3, %s382_s27  ;;  %p386_p2 = scmp.lt.u32.totalorder %s382_s27, %s494_s3 }
  0x64   :  { %p388_p3 = pnand %p386_p2, %p383_p1 }
  0x66   :  { %391 = shalt.err (!%p388_p3)
}
  0x67   :  { %291 = dma.vmem_to_hbm [thread:$0]  %s286_s21, 4096, %s494_s3, [#allocation4], %s400_s24, %s400_s24, %s401_s25  }
  0x68   :  { %396 = dma.done.wait [#allocation4], 4096  }
  0x69   :  { %397 = vsyncadd [#allocation4], 4294963200 }
  0x6a   :  { %295 = vsyncpa [#allocation3], 1 }
  0x6b   :  { %296 = vsyncpa [#allocation6], 1 }
  0x6c   :  { %297 = vsyncpa [#allocation4], 1 }

</bundles_post_ra>
